<compile_context>
chip_gen: v6e
topology: v6e:2x2x1
jax: 0.10.0
libtpu: 0.0.40
codegen_flags: <defaults>
</compile_context>

<pallas_src>
import jax
import jax.numpy as jnp
from jax.experimental import pallas as pl
from jax.experimental.pallas import tpu as pltpu


def _round_up(n: int, m: int) -> int:
    return ((n + m - 1) // m) * m


def _choose_tile_rows(m_rows: int, d_eff: int, itemsize: int) -> int:
    """Rows per grid step, sized against the lane-padded VMEM footprint."""
    d_lanes = _round_up(d_eff, 128)          # minor dim is lane-padded in VMEM
    row_bytes = d_lanes * itemsize
    # ~2 MiB per input block: amortizes the ~0.35 us per-grid-step overhead and
    # sits on the HBM-roofline plateau, while 2x(double-buffer) stays well
    # under the 16 MiB v5e scoped-VMEM default.
    target_bytes = 2 * 1024 * 1024
    tm = (target_bytes // row_bytes) // 128 * 128
    tm = max(tm, 128)                         # output last dim needs 128-lane multiples
    if m_rows <= tm:
        return m_rows                         # single full-extent block
    return tm


def _sigmoid_masking_kernel(x_ref, w_ref, b_ref, o_ref):
    # x_ref: (TM, D_eff) VMEM input rows (lane-repacked when D < 128)
    # w_ref: (K, D_eff)  VMEM weight LHS (block-diagonal when K > 1), resident
    # b_ref: (1,)        SMEM scalar bias (f32)
    # o_ref: (K, TM)     VMEM lane-dense output tile
    logits = jax.lax.dot_general(
        w_ref[...], x_ref[...],
        dimension_numbers=(((1,), (1,)), ((), ())),
        preferred_element_type=jnp.float32,
    )
    logits = logits + b_ref[0]
    o_ref[...] = jax.nn.sigmoid(logits).astype(o_ref.dtype)


def sigmoid_masking(x, weight, bias, *, tile_rows=None):
    """Pallas TPU implementation of SigmoidMasking.

    x: (..., D); weight: (1, D) (PyTorch nn.Linear layout); bias: (1,).
    Returns sigmoid(x @ weight.T + bias) with shape (..., 1), dtype of x.
    """
    orig_shape = x.shape
    d = orig_shape[-1]
    x2d = x.reshape(-1, d)
    m = x2d.shape[0]
    out_dtype = x.dtype
    itemsize = jnp.dtype(x2d.dtype).itemsize

    # Lane repack: view k consecutive rows as one (k*D)-wide row so the minor
    # dim fills all 128 lanes.  Contiguous reshape -> no HBM copy.
    k = 1
    if d < 128 and 128 % d == 0:
        k_cand = 128 // d
        if m % k_cand == 0:
            k = k_cand
    m_rows = m // k
    d_eff = k * d
    x_in = x2d.reshape(m_rows, d_eff)

    # Weight as MXU LHS; block-diagonal replication when repacked.
    w_flat = weight.reshape(-1).astype(x_in.dtype)
    if k == 1:
        w_lhs = w_flat.reshape(1, d_eff)
    else:
        eye = jnp.eye(k, dtype=x_in.dtype)
        w_lhs = (eye[:, :, None] * w_flat[None, None, :]).reshape(k, d_eff)
    b_smem = bias.reshape(1).astype(jnp.float32)

    if tile_rows is None:
        tm = _choose_tile_rows(m_rows, d_eff, itemsize)
    else:
        tm = int(tile_rows)
        if tm >= m_rows:
            tm = m_rows
        else:
            assert tm % 128 == 0, "tile_rows must be a multiple of 128"

    num_tiles = pl.cdiv(m_rows, tm)           # ragged last block handled by Pallas

    # Explicit scoped-VMEM limit only if the double-buffered, lane-padded
    # footprint could exceed the most conservative default (16 MiB on v5e).
    d_lanes = _round_up(d_eff, 128)
    block_bytes = tm * d_lanes * itemsize
    out_block_bytes = 8 * _round_up(tm, 128) * itemsize
    footprint = 2 * block_bytes + 2 * out_block_bytes + 8 * d_lanes * itemsize
    vmem_limit = None
    if footprint > 12 * 1024 * 1024:
        vmem_limit = min(_round_up(footprint + (2 << 20), 1 << 20), 60 * 1024 * 1024)

    cost = pl.CostEstimate(
        flops=2 * m * d,
        transcendentals=m,
        bytes_accessed=m * d * itemsize       # x read
        + m * itemsize                        # output write
        + k * d_eff * itemsize                # weight
        + 4,                                  # bias
    )

    out = pl.pallas_call(
        _sigmoid_masking_kernel,
        out_shape=jax.ShapeDtypeStruct((k, m_rows), out_dtype),
        grid_spec=pl.GridSpec(
            grid=(num_tiles,),
            in_specs=[
                pl.BlockSpec((tm, d_eff), lambda i: (i, 0)),            # x tile
                pl.BlockSpec((k, d_eff), lambda i: (0, 0)),             # weight (resident)
                pl.BlockSpec(memory_space=pltpu.MemorySpace.SMEM),      # bias scalar
            ],
            out_specs=pl.BlockSpec((k, tm), lambda i: (0, i)),          # lane-dense
        ),
        compiler_params=pltpu.CompilerParams(
            dimension_semantics=("parallel",),
            vmem_limit_bytes=vmem_limit,
        ),
        cost_estimate=cost,
    )(x_in, w_lhs, b_smem)

    # Undo the row repack: out[j, i] is the logit of flat row i*k + j.
    y = out.T.reshape(m, 1)
    return y.reshape(*orig_shape[:-1], 1)


def _reference(x, weight, bias):
    return jax.nn.sigmoid(jnp.einsum("...d,od->...o", x, weight) + bias)


if __name__ == "__main__":
    B, S, EMB = 2, 8, 32

    key = jax.random.PRNGKey(0)
    kx, kw, kb = jax.random.split(key, 3)

    x = jax.random.normal(kx, (B, S, EMB), dtype=jnp.float32)

    # Parameter init mimicking nn.Linear's uniform(-1/sqrt(D), 1/sqrt(D)).
    bound = 1.0 / jnp.sqrt(jnp.float32(EMB))
    weight = jax.random.uniform(kw, (1, EMB), jnp.float32, -bound, bound)
    bias = jax.random.uniform(kb, (1,), jnp.float32, -bound, bound)

    # Main path: D=32 triggers the k=4 lane repack, single full-extent tile.
    y = sigmoid_masking(x, weight, bias)
    jax.block_until_ready(y)
    ref = _reference(x, weight, bias)
    assert y.shape == (B, S, 1), y.shape
    assert jnp.allclose(y, ref, atol=1e-5, rtol=1e-5), float(jnp.max(jnp.abs(y - ref)))

    # Fallback path: M=210 is not divisible by k=4 -> k=1, and tile_rows=128
    # forces a multi-tile grid with a ragged (masked-store) last block.
    x2 = jax.random.normal(jax.random.PRNGKey(1), (3, 70, EMB), dtype=jnp.float32)
    y2 = sigmoid_masking(x2, weight, bias, tile_rows=128)
    jax.block_until_ready(y2)
    ref2 = _reference(x2, weight, bias)
    assert y2.shape == (3, 70, 1), y2.shape
    assert jnp.allclose(y2, ref2, atol=1e-5, rtol=1e-5), float(jnp.max(jnp.abs(y2 - ref2)))

    print("KERNEL_OK")
</pallas_src>

<mosaic_0001>
module attributes {stable_mosaic.version = 11 : i64} {
  func.func @_sigmoid_masking_kernel(%arg0: i32, %arg1: memref<4x128xf32, #tpu.memory_space<vmem>>, %arg2: memref<4x128xf32, #tpu.memory_space<vmem>>, %arg3: memref<1xf32, #tpu.memory_space<smem>>, %arg4: memref<4x4xf32, #tpu.memory_space<vmem>>) attributes {dimension_semantics = [#tpu.dimension_semantics<parallel>], iteration_bounds = array<i64: 1>, scalar_prefetch = 0 : i64, scratch_operands = 0 : i64, tpu.core_type = #tpu.core_type<tc>, window_params = [{transform_indices = @transform_0, window_bounds = array<i64: 4, 128>}, {pipeline_mode = #tpu.pipeline_mode<synchronous>, transform_indices = @transform_1, window_bounds = array<i64: 4, 128>}, {transform_indices = @transform_2, window_bounds = array<i64: 1>}, {transform_indices = @transform_3, window_bounds = array<i64: 4, 4>}]} {
    %c0 = arith.constant 0 : index
    %c0_0 = arith.constant 0 : index
    %0 = vector.load %arg2[%c0, %c0_0] : memref<4x128xf32, #tpu.memory_space<vmem>>, vector<4x128xf32>
    %c0_1 = arith.constant 0 : index
    %c0_2 = arith.constant 0 : index
    %1 = vector.load %arg1[%c0_1, %c0_2] : memref<4x128xf32, #tpu.memory_space<vmem>>, vector<4x128xf32>
    %cst = arith.constant dense<0.000000e+00> : vector<4x4xf32>
    %2 = tpu.matmul %0, %1, %cst {dimension_numbers = #tpu.dot_dimension_numbers<[1], [1], [0], [0], [0, 0, 1, 0], [], []>} : vector<4x128xf32>, vector<4x128xf32>, vector<4x4xf32> -> vector<4x4xf32>
    %c0_3 = arith.constant 0 : index
    %3 = memref.load %arg3[%c0_3] : memref<1xf32, #tpu.memory_space<smem>>
    %4 = vector.broadcast %3 : f32 to vector<4x4xf32>
    %5 = arith.addf %2, %4 : vector<4x4xf32>
    %6 = arith.negf %5 : vector<4x4xf32>
    %7 = math.exp %6 : vector<4x4xf32>
    %cst_4 = arith.constant 1.000000e+00 : f32
    %8 = vector.broadcast %cst_4 : f32 to vector<4x4xf32>
    %9 = arith.addf %8, %7 : vector<4x4xf32>
    %10 = arith.divf %8, %9 : vector<4x4xf32>
    %c0_5 = arith.constant 0 : index
    %c0_6 = arith.constant 0 : index
    %11 = vector.load %arg4[%c0_5, %c0_6] : memref<4x4xf32, #tpu.memory_space<vmem>>, vector<4x4xf32>
    tpu.vector_store %arg4[%c0_5, %c0_6], %10 {strides = array<i32>} : memref<4x4xf32, #tpu.memory_space<vmem>>, vector<4x4xf32>,
    return
  }
  func.func @transform_0(%arg0: i32) -> (i32, i32) {
    %c0_i32 = arith.constant 0 : i32
    %c0_i32_0 = arith.constant 0 : i32
    return %arg0, %c0_i32 : i32, i32
  }
  func.func @transform_1(%arg0: i32) -> (i32, i32) {
    %c0_i32 = arith.constant 0 : i32
    %c0_i32_0 = arith.constant 0 : i32
    %c0_i32_1 = arith.constant 0 : i32
    return %c0_i32, %c0_i32_0 : i32, i32
  }
  func.func @transform_2(%arg0: i32) -> i32 {
    %c0_i32 = arith.constant 0 : i32
    %c0_i32_0 = arith.constant 0 : i32
    return %c0_i32 : i32
  }
  func.func @transform_3(%arg0: i32) -> (i32, i32) {
    %c0_i32 = arith.constant 0 : i32
    %c0_i32_0 = arith.constant 0 : i32
    return %c0_i32, %arg0 : i32, i32
  }
}

</mosaic_0001>

<bundles_post_ra>
// kernel: tpu_custom_call.1
= control target key start
LH: loop header
LB: loop body
LE: loop exit
PB: predicated region body
PF: predicated region fallthrough
CT: control target
= control target key end

     0   :  { %9 = vsyncpa [#allocation4], 0  ;;  %s258_s0 = inlined_call_operand.hbm [shape: f32[4,128], index: 0, kind: input, shape index: {}]   ;;  %s259_s1 = inlined_call_operand.hbm [shape: f32[4,128], index: 1, kind: input, shape index: {}]   ;;  %s260_s2 = inlined_call_operand.<no memory space> [shape: f32[1], index: 2, kind: input, shape index: {}]   ;;  %s261_s3 = inlined_call_operand.hbm [shape: f32[4,4], index: 3, kind: output, shape index: {}]  }
   0x1   :  { %10 = vsyncpa [#allocation7], 0 }
   0x2   :  { %11 = vsyncpa [#allocation5], 0  ;;  %s221_s12 = smov [#allocation3]   ;;  %s222_s14 = smov [#allocation6]  }
   0x3   :  { %s18_s13 = sshll.u32 %s221_s12, 4  ;;  %s28_s15 = sshll.u32 %s222_s14, 4  ;;  %s19_s13 = int_to_ptr.vmem [resolvable:$true] %s18_s13  ;;  %s29_s15 = int_to_ptr.vmem [resolvable:$true] %s28_s15 }
   0x4   :  { %s163_s16 = scalar_lea.vmem %s19_s13, 64  ;;  %p168_p1 = scmp.lt.s32.totalorder %s19_s13, %s19_s13 }
   0x5   :  { %p164_p0 = scmp.ne.s32.totalorder %s19_s13, %s163_s16  ;;  %p169_p2 = scmp.lt.s32.totalorder %s163_s16, %s163_s16 }
   0x7   :  { %p170_p3 = por %p169_p2, %p168_p1 }
   0x9   :  { %p171_p4 = pnand %p170_p3, %p164_p0 }
   0xb   :  { %174 = shalt.err (!%p171_p4)
}
   0xc   :  { %21 = dma.hbm_to_vmem [thread:$0]  %s258_s0, 64, %s19_s13, [#allocation4]  }
   0xd   :  { %s183_s19 = scalar_lea.vmem %s29_s15, 64  ;;  %p188_p6 = scmp.lt.s32.totalorder %s29_s15, %s29_s15 }
   0xe   :  { %p184_p5 = scmp.ne.s32.totalorder %s29_s15, %s183_s19  ;;  %p189_p7 = scmp.lt.s32.totalorder %s183_s19, %s183_s19 }
  0x10   :  { %p190_p8 = por %p189_p7, %p188_p6 }
  0x12   :  { %p191_p9 = pnand %p190_p8, %p184_p5 }
  0x14   :  { %194 = shalt.err (!%p191_p9)
}
  0x15   :  { %31 = dma.hbm_to_vmem [thread:$0]  %s259_s1, 64, %s29_s15, [#allocation7]  }
  0x16   :  { %215 = dma.done.wait [#allocation4], 64  }
  0x17   :  { %216 = vsyncadd [#allocation4], 4294967232 }
  0x18   :  { %217 = dma.done.wait [#allocation7], 64  }
  0x19   :  { %218 = vsyncadd [#allocation7], 4294967232  ;;  %v223_v0 = vmov 0.0   ;;  %vm224_vm0 = vmmov 0   ;;  %v41_v1 = vld [vmem:[#allocation3] sm:$0xf]  ;;  %v43_v3 = vstv %s260_s2 }
  0x1a   :  { %141 = vmatprep.subr.mxu0 %v223_v0  ;;  %143 = vmatprep.mubr.msk.f32.mxu0 %vm224_vm0, %v223_v0  ;;  %v40_v2 = vld [vmem:[#allocation6] sm:$0xf]  ;;  %s225_s1 = smov [#allocation8]   ;;  %vm120_vm1 = vcmask 27648  }
  0x1b   :  { %142 = vmatpush3.xpose.msra.mxu0 %v41_v1  ;;  %s128_s23 = sshll.u32 %s225_s1, 4  ;;  %s129_s23 = int_to_ptr.vmem [resolvable:$true] %s128_s23 }
  0x1c   :  { %s195_s24 = scalar_lea.vmem %s129_s23, 64  ;;  %p200_p11 = scmp.lt.s32.totalorder %s129_s23, %s129_s23 }
  0x1d   :  { %p196_p10 = scmp.ne.s32.totalorder %s129_s23, %s195_s24  ;;  %p201_p12 = scmp.lt.s32.totalorder %s195_s24, %s195_s24 }
  0x1e   :  { %144 = vmatmul.mubr.f32.vlgmr.msra.gmra.mxu0 %v40_v2 }
  0x1f   :  { %p202_p13 = por %p201_p12, %p200_p11 }
  0x21   :  { %p203_p0 = pnand %p202_p13, %p196_p10 }
  0xde   :  { %v110_v4 = vpop.f32.mrf.mxu0 }
  0xdf   :  { %v111_v5 = vadd.f32 %v110_v4, %v43_v3 }
  0xe0   :  { %v145_v6 = vpop.f32.mrf.mxu0 }
  0xe1   :  { %v138_v7 = vmul.f32 -1.442695, %v111_v5 }
  0xe3   :  { %151 = vpow2.f32 %v138_v7 }
  0xf0   :  { %v152_v8 = vpop.eup %151 }
  0xf1   :  { %v117_v9 = vadd.f32 1.0, %v152_v8 }
  0xf3   :  { %153 = vrcp.f32 %v117_v9 }
 0x100   :  { %v154_v10 = vpop.eup %153 }
 0x101   :  { %121 = vst.msk [vmem:[#allocation8] sm:$0xf] %vm120_vm1, %v154_v10 }
 0x102   :  { %206 = shalt.err (!%p203_p0)
}
 0x103   :  { %131 = dma.vmem_to_hbm [thread:$0]  %s129_s23, 64, %s261_s3, [#allocation5]  }
 0x104   :  { %219 = dma.done.wait [#allocation5], 64  }
 0x105   :  { %220 = vsyncadd [#allocation5], 4294967232 }
 0x106   :  { %135 = vsyncpa [#allocation4], 1 }
 0x107   :  { %136 = vsyncpa [#allocation7], 1 }
 0x108   :  { %137 = vsyncpa [#allocation5], 1 }

</bundles_post_ra>
